<compile_context>
chip_gen: v7x
topology: tpu7x:2x2x1
jax: 0.10.0
libtpu: 0.0.40
codegen_flags: <defaults>
</compile_context>

<pallas_src>
import functools

import jax
import jax.numpy as jnp
from jax.experimental import pallas as pl
from jax.experimental.pallas import tpu as pltpu

hwgq_steps = {1: 0.799, 2: 0.538, 3: 0.3217, 4: 0.185,
              5: 0.104, 6: 0.058, 7: 0.033, 8: 0.019}

_LANES = 512  # lane-dense output width (multiple of 128)


def _hwgq_kernel(x_ref, o_ref, *, step, clip_thr):
    """Elementwise HWGQ quantization on one (TM, LANES) tile (bit < 32)."""
    x = x_ref[...].astype(jnp.float32)
    # clamp(x, 0, clip_thr): maximum + minimum (2 VALU ops)
    y = jnp.minimum(jnp.maximum(x, 0.0), clip_thr)
    # keep the division by `step` (not a reciprocal multiply) so rounding at
    # half-step boundaries matches torch.round(y / step) bit-for-bit.
    q = jnp.round(y / step) * step
    o_ref[...] = q.astype(o_ref.dtype)


def _relu_kernel(x_ref, o_ref):
    """bit >= 32 path: plain ReLU."""
    x = x_ref[...]
    o_ref[...] = jnp.maximum(x, jnp.zeros((), x.dtype)).astype(o_ref.dtype)


def hwgq(x, bit=2):
    """Pallas-backed forward of the HWGQ module.

    x   : any-shape float array (e.g. NCHW activations)
    bit : static int; bit >= 32 means plain ReLU
    """
    orig_shape = x.shape
    orig_dtype = x.dtype
    total = int(x.size)

    # --- flatten to a lane-dense (rows, LANES) slab, zero-padded to tiles ---
    rows = pl.cdiv(total, _LANES)
    tm = min(256, ((rows + 7) // 8) * 8)          # row-tile, multiple of 8
    rows_padded = ((rows + tm - 1) // tm) * tm
    padded_total = rows_padded * _LANES

    x_flat = x.reshape(-1)
    if padded_total != total:
        x_flat = jnp.pad(x_flat, (0, padded_total - total))
    x2 = x_flat.reshape(rows_padded, _LANES)

    if bit >= 32:
        kernel = _relu_kernel
    else:
        step = hwgq_steps[bit]
        clip_thr = step * float(2 ** bit - 1)
        kernel = functools.partial(_hwgq_kernel, step=step, clip_thr=clip_thr)

    grid = (rows_padded // tm,)
    out2 = pl.pallas_call(
        kernel,
        out_shape=jax.ShapeDtypeStruct((rows_padded, _LANES), orig_dtype),
        grid=grid,
        in_specs=[pl.BlockSpec((tm, _LANES), lambda i: (i, 0))],
        out_specs=pl.BlockSpec((tm, _LANES), lambda i: (i, 0)),
        compiler_params=pltpu.CompilerParams(
            dimension_semantics=("parallel",)),
    )(x2)

    return out2.reshape(-1)[:total].reshape(orig_shape)


def _reference(x, bit=2):
    """Pure-JAX reference mirroring the PyTorch forward."""
    if bit >= 32:
        return jnp.maximum(x, 0.0)
    step = hwgq_steps[bit]
    clip_thr = step * float(2 ** bit - 1)
    y = jnp.clip(x, 0.0, clip_thr)
    return jnp.round(y / step) * step


# TODO(synk): backward of _hwgq is a straight-through estimator (identity
# gradient); only the forward pass is implemented here.

if __name__ == "__main__":
    key = jax.random.PRNGKey(0)
    x = jax.random.normal(key, (2, 4, 16, 16), dtype=jnp.float32)

    # default module config: bit = 2
    out = hwgq(x, bit=2)
    out = jax.block_until_ready(out)
    ref = _reference(x, bit=2)
    assert out.shape == x.shape and out.dtype == x.dtype
    assert jnp.allclose(out, ref, atol=1e-6, rtol=1e-6)

    # also exercise the bit >= 32 (ReLU) path
    out32 = jax.block_until_ready(hwgq(x, bit=32))
    ref32 = _reference(x, bit=32)
    assert jnp.allclose(out32, ref32, atol=1e-6, rtol=1e-6)

    print("KERNEL_OK")
</pallas_src>

<mosaic_0001>
module attributes {stable_mosaic.version = 11 : i64} {
  func.func @_hwgq_kernel(%arg0: i32, %arg1: memref<8x512xf32, #tpu.memory_space<vmem>>, %arg2: memref<8x512xf32, #tpu.memory_space<vmem>>) attributes {dimension_semantics = [#tpu.dimension_semantics<parallel>], iteration_bounds = array<i64: 1>, scalar_prefetch = 0 : i64, scratch_operands = 0 : i64, tpu.core_type = #tpu.core_type<tc>, window_params = [{transform_indices = @transform_0, window_bounds = array<i64: 8, 512>}, {transform_indices = @transform_1, window_bounds = array<i64: 8, 512>}]} {
    %c0 = arith.constant 0 : index
    %c0_0 = arith.constant 0 : index
    %0 = vector.load %arg1[%c0, %c0_0] : memref<8x512xf32, #tpu.memory_space<vmem>>, vector<8x512xf32>
    %cst = arith.constant 0.000000e+00 : f32
    %1 = vector.broadcast %cst : f32 to vector<8x512xf32>
    %2 = arith.maximumf %0, %1 : vector<8x512xf32>
    %cst_1 = arith.constant 1.614000e+00 : f32
    %3 = vector.broadcast %cst_1 : f32 to vector<8x512xf32>
    %4 = arith.minimumf %2, %3 : vector<8x512xf32>
    %cst_2 = arith.constant 5.380000e-01 : f32
    %5 = vector.broadcast %cst_2 : f32 to vector<8x512xf32>
    %6 = arith.divf %4, %5 : vector<8x512xf32>
    %7 = math.roundeven %6 : vector<8x512xf32>
    %cst_3 = arith.constant 5.380000e-01 : f32
    %8 = vector.broadcast %cst_3 : f32 to vector<8x512xf32>
    %9 = arith.mulf %7, %8 : vector<8x512xf32>
    %c0_4 = arith.constant 0 : index
    %c0_5 = arith.constant 0 : index
    %10 = vector.load %arg2[%c0_4, %c0_5] : memref<8x512xf32, #tpu.memory_space<vmem>>, vector<8x512xf32>
    tpu.vector_store %arg2[%c0_4, %c0_5], %9 {strides = array<i32>} : memref<8x512xf32, #tpu.memory_space<vmem>>, vector<8x512xf32>,
    return
  }
  func.func @transform_0(%arg0: i32) -> (i32, i32) {
    %c0_i32 = arith.constant 0 : i32
    %c0_i32_0 = arith.constant 0 : i32
    return %arg0, %c0_i32 : i32, i32
  }
  func.func @transform_1(%arg0: i32) -> (i32, i32) {
    %c0_i32 = arith.constant 0 : i32
    %c0_i32_0 = arith.constant 0 : i32
    return %arg0, %c0_i32 : i32, i32
  }
}

</mosaic_0001>

<bundles_post_ra>
// kernel: tpu_custom_call.1
= control target key start
LH: loop header
LB: loop body
LE: loop exit
PB: predicated region body
PF: predicated region fallthrough
CT: control target
= control target key end

     0   :  { %6 = vsyncpa [#allocation3], 0  ;;  %s155_s0 = inlined_call_operand.hbm [shape: f32[8,512], index: 0, kind: input, shape index: {}]   ;;  %s156_s1 = inlined_call_operand.hbm [shape: f32[8,512], index: 1, kind: output, shape index: {}]  }
   0x1   :  { %7 = vsyncpa [#allocation4], 0  ;;  %s119_s6 = smov [#allocation2]   ;;  %s71_s10 = scalar_lea.hbm %s155_s0, 512 }
   0x2   :  { %s14_s7 = sshll.u32 %s119_s6, 4  ;;  %p72_p0 = scmp.ne.s32.totalorder %s155_s0, %s71_s10  ;;  %s15_s7 = int_to_ptr.vmem [resolvable:$true] %s14_s7 }
   0x3   :  { %p75_p1 = scmp.lt.u32.totalorder %s71_s10, %s155_s0 }
   0x5   :  { %p77_p2 = pnand %p75_p1, %p72_p0 }
   0x7   :  { %80 = shalt.err (!%p77_p2)
}
   0x8   :  { %s81_s15 = scalar_lea.vmem %s15_s7, 512  ;;  %p86_p4 = scmp.lt.s32.totalorder %s15_s7, %s15_s7 }
   0x9   :  { %p82_p3 = scmp.ne.s32.totalorder %s15_s7, %s81_s15  ;;  %p87_p5 = scmp.lt.s32.totalorder %s81_s15, %s81_s15 }
   0xb   :  { %p88_p6 = por %p87_p5, %p86_p4 }
   0xd   :  { %p89_p7 = pnand %p88_p6, %p82_p3 }
   0xf   :  { %92 = shalt.err (!%p89_p7)
}
  0x10   :  { %17 = dma.hbm_to_vmem [thread:$0]  %s155_s0, 512, %s15_s7, [#allocation3]  }
  0x11   :  { %115 = dma.done.wait [#allocation3], 512  }
  0x12   :  { %116 = vsyncadd [#allocation3], 4294966784  ;;  %v21_v0 = vld [vmem:[#allocation2] sm:$0xff]  ;;  %v22_v1 = vld [vmem:[#allocation2 + $0x8] sm:$0xff]  ;;  %s120_s0 = smov [#allocation5]  }
  0x13   :  { %v23_v2 = vld [vmem:[#allocation2 + $0x10] sm:$0xff]  ;;  %v25_v3 = vmax.f32 %v21_v0, 0.0  ;;  %v26_v4 = vmax.f32 %v22_v1, 0.0  ;;  %v24_v6 = vld [vmem:[#allocation2 + $0x18] sm:$0xff]  ;;  %s56_s18 = sshll.u32 %s120_s0, 4  ;;  %s57_s18 = int_to_ptr.vmem [resolvable:$true] %s56_s18 }
  0x14   :  { %v27_v5 = vmax.f32 %v23_v2, 0.0  ;;  %v28_v7 = vmax.f32 %v24_v6, 0.0  ;;  %s93_s19 = scalar_lea.vmem %s57_s18, 512  ;;  %p98_p9 = scmp.lt.s32.totalorder %s57_s18, %s57_s18 }
  0x15   :  { %v29_v8 = vmin.f32 %v25_v3, 1.614  ;;  %v30_v9 = vmin.f32 %v26_v4, 1.614  ;;  %p94_p8 = scmp.ne.s32.totalorder %s57_s18, %s93_s19  ;;  %p99_p10 = scmp.lt.s32.totalorder %s93_s19, %s93_s19 }
  0x16   :  { %v31_v10 = vmin.f32 %v27_v5, 1.614  ;;  %v32_v11 = vmin.f32 %v28_v7, 1.614 }
  0x17   :  { %v34_v12 = vmul.f32 1.8587362, %v29_v8  ;;  %v35_v13 = vmul.f32 1.8587362, %v30_v9  ;;  %p100_p11 = por %p99_p10, %p98_p9 }
  0x18   :  { %v36_v14 = vmul.f32 1.8587362, %v31_v10  ;;  %v37_v15 = vmul.f32 1.8587362, %v32_v11 }
  0x19   :  { %v65_v16 = vround.rtne.f32 %v34_v12  ;;  %v66_v17 = vround.rtne.f32 %v35_v13  ;;  %p101_p12 = pnand %p100_p11, %p94_p8 }
  0x1a   :  { %v67_v18 = vround.rtne.f32 %v36_v14  ;;  %v68_v19 = vround.rtne.f32 %v37_v15 }
  0x1b   :  { %v42_v20 = vmul.f32 0.538, %v65_v16  ;;  %v43_v21 = vmul.f32 0.538, %v66_v17 }
  0x1c   :  { %v44_v22 = vmul.f32 0.538, %v67_v18  ;;  %v45_v23 = vmul.f32 0.538, %v68_v19 }
  0x1d   :  { %46 = vst [vmem:[#allocation5] sm:$0xff] %v42_v20  ;;  %47 = vst [vmem:[#allocation5 + $0x8] sm:$0xff] %v43_v21 }
  0x1e   :  { %48 = vst [vmem:[#allocation5 + $0x10] sm:$0xff] %v44_v22  ;;  %49 = vst [vmem:[#allocation5 + $0x18] sm:$0xff] %v45_v23 }
  0x1f   :  { %104 = shalt.err (!%p101_p12)
}
  0x20   :  { %s105_s22 = scalar_lea.hbm %s156_s1, 512 }
  0x21   :  { %p106_p13 = scmp.ne.s32.totalorder %s156_s1, %s105_s22  ;;  %p109_p0 = scmp.lt.u32.totalorder %s105_s22, %s156_s1 }
  0x23   :  { %p111_p1 = pnand %p109_p0, %p106_p13 }
  0x25   :  { %114 = shalt.err (!%p111_p1)
}
  0x26   :  { %59 = dma.vmem_to_hbm [thread:$0]  %s57_s18, 512, %s156_s1, [#allocation4]  }
  0x27   :  { %117 = dma.done.wait [#allocation4], 512  }
  0x28   :  { %118 = vsyncadd [#allocation4], 4294966784 }
  0x29   :  { %63 = vsyncpa [#allocation3], 1 }
  0x2a   :  { %64 = vsyncpa [#allocation4], 1 }

</bundles_post_ra>
